<compile_context>
chip_gen: v5e
topology: v5e:2x2
jax: 0.10.0
libtpu: 0.0.40
codegen_flags: <defaults>
</compile_context>

<pallas_src>
import functools

import jax
import jax.numpy as jnp
from jax import lax
from jax.experimental import pallas as pl
from jax.experimental.pallas import tpu as pltpu


def _wce_kernel(x_ref, t_ref, out_ref, *, num_classes: int, tile_rows: int,
                hw: int, mask_label: bool, mask_garbage: bool,
                unroll_classes: bool):
    """Accumulate per-class {target mass, NLL sum, pixel count} partials.

    x_ref, t_ref : (C, TR, 128) logits / soft targets (any float dtype)
    out_ref      : (3*C, 8, 128) f32 resident accumulator for this batch
                   layout: [3*c + 0] mass, [3*c + 1] nll, [3*c + 2] count
    """
    C = num_classes
    tr = tile_rows
    j = pl.program_id(1)
    f32 = jnp.float32

    @pl.when(j == 0)
    def _init():
        out_ref[...] = jnp.zeros_like(out_ref)

    # Validity mask for the ragged tail (trace-time gated: only emitted when the
    # covered pixels exceed hw, i.e. lane pad / row pad / partial last block).
    if mask_label or mask_garbage:
        r = lax.broadcasted_iota(jnp.int32, (tr, 128), 0)
        l = lax.broadcasted_iota(jnp.int32, (tr, 128), 1)
        valid = (j * tr + r) * 128 + l < hw                       # (TR, 128) bool
    else:
        valid = None

    def fold(v):  # (TR, 128) -> (8, 128): cross-vreg adds only
        if tr == 8:
            return v
        return v.reshape(tr // 8, 8, 128).sum(axis=0)

    # ---- Pass 1: per-pixel channel max of logits + first-occurrence argmax of
    #      the target (running strict-> chain; matches torch/jnp tie-breaking).
    def p1_body(c, carry):
        xmax, tmax, lbl = carry
        xc = x_ref[c].astype(f32)
        tc = t_ref[c].astype(f32)
        upd = tc > tmax
        return (jnp.maximum(xmax, xc),
                jnp.where(upd, tc, tmax),
                jnp.where(upd, c, lbl))

    p1_init = (jnp.full((tr, 128), -jnp.inf, f32),
               jnp.full((tr, 128), -jnp.inf, f32),
               jnp.zeros((tr, 128), jnp.int32))
    if unroll_classes:
        carry = p1_init
        for c in range(C):
            carry = p1_body(c, carry)
        xmax, _, lbl = carry
    else:
        xmax, _, lbl = lax.fori_loop(0, C, p1_body, p1_init, unroll=4)

    if valid is not None:
        # Padded / out-of-bounds pixels select no class. Every downstream use of
        # lbl goes through `lbl == c` selects (never multiplies), so garbage
        # logits/targets in the ragged region cannot leak NaN/inf into the sums.
        lbl = jnp.where(valid, lbl, -1)

    # ---- Pass 2: softmax denominator + per-class target mass & pixel counts.
    def p2_body(c, sumexp):
        xc = x_ref[c].astype(f32)
        sumexp = sumexp + jnp.exp(xc - xmax)      # <= 1 on every real pixel
        tc = t_ref[c].astype(f32)
        if mask_garbage:
            tc = jnp.where(valid, tc, 0.0)        # select (NaN-safe), not multiply
        onehot = (lbl == c).astype(f32)
        out_ref[3 * c + 0] += fold(tc)            # per-class target mass
        out_ref[3 * c + 2] += fold(onehot)        # per-class pixel count
        return sumexp

    sumexp0 = jnp.zeros((tr, 128), f32)
    if unroll_classes:
        sumexp = sumexp0
        for c in range(C):
            sumexp = p2_body(c, sumexp)
    else:
        sumexp = lax.fori_loop(0, C, p2_body, sumexp0, unroll=4)

    lse = xmax + jnp.log(sumexp)                  # garbage only on invalid pixels

    # ---- Pass 3: per-class NLL sums (select keeps invalid pixels at exactly 0).
    def p3_body(c, carry):
        nll_c = jnp.where(lbl == c, lse - x_ref[c].astype(f32), 0.0)
        out_ref[3 * c + 1] += fold(nll_c)
        return carry

    if unroll_classes:
        for c in range(C):
            p3_body(c, 0)
    else:
        lax.fori_loop(0, C, p3_body, 0, unroll=4)


def weighted_cross_entropy_loss(logits: jax.Array, target: jax.Array) -> jax.Array:
    """Pallas equivalent of WeightedCrossEntropyLoss().forward(input, target).

    ignore_index=-1 is unreachable (labels come from argmax, always >= 0).
    """
    assert logits.shape == target.shape
    B, C, H, W = logits.shape
    hw = H * W

    # Free reshapes only: no transpose, no dtype cast on the HBM side.
    x = logits.reshape(B, C, hw)
    t = target.reshape(B, C, hw)

    # Lane pad only when hw % 128 != 0 (required by the (..., S, 128) reshape);
    # row pad only for tiny inputs (S < 8).  Everything else uses partial blocks.
    s = pl.cdiv(hw, 128)
    s_arr = max(s, 8)
    pad = s_arr * 128 - hw
    if pad:
        x = jnp.pad(x, ((0, 0), (0, 0), (0, pad)))
        t = jnp.pad(t, ((0, 0), (0, 0), (0, pad)))
    x = x.reshape(B, C, s_arr, 128)
    t = t.reshape(B, C, s_arr, 128)

    # --- tile sizing: double-buffered input stream kept around ~16 MiB. ---
    x_item = x.dtype.itemsize
    t_item = t.dtype.itemsize
    align = max(8, 8 * (4 // max(1, min(x_item, t_item))))    # 8 / 16 / 32
    in_row_bytes = 2 * C * 128 * (x_item + t_item)            # per row, 2 buffers
    budget = 16 * 1024 * 1024
    tr = max(8, budget // in_row_bytes)
    tr = min(tr, 1024, s_arr)                                 # never exceed extent
    tr = max(8, (tr // align) * align) if tr >= align else max(8, (tr // 8) * 8)
    n_j = pl.cdiv(s_arr, tr)

    mask_garbage = (s_arr % tr) != 0            # ragged last block -> unspecified rows
    mask_label = mask_garbage or (n_j * tr * 128 != hw)

    # VMEM footprint -> scoped limit (kept under v7x's 64 MiB physical ceiling).
    vmem_bytes = (tr * in_row_bytes                  # streamed inputs (2 bufs each)
                  + 2 * 3 * C * 8 * 128 * 4          # resident output block
                  + 12 * tr * 128 * 4)               # f32 temporaries
    vmem_limit = int(min(max(int(vmem_bytes * 1.3) + (2 << 20), 32 << 20), 56 << 20))

    n_elem = B * C * hw
    cost = pl.CostEstimate(
        flops=16 * n_elem,
        transcendentals=n_elem + B * hw,
        bytes_accessed=n_elem * (x_item + t_item) + B * 3 * C * 8 * 128 * 4,
    )

    kernel = functools.partial(
        _wce_kernel, num_classes=C, tile_rows=tr, hw=hw,
        mask_label=mask_label, mask_garbage=mask_garbage,
        unroll_classes=(C <= 32))

    partials = pl.pallas_call(
        kernel,
        out_shape=jax.ShapeDtypeStruct((B, 3 * C, 8, 128), jnp.float32),
        grid=(B, n_j),
        in_specs=[
            pl.BlockSpec((None, C, tr, 128), lambda b, j: (b, 0, j, 0)),
            pl.BlockSpec((None, C, tr, 128), lambda b, j: (b, 0, j, 0)),
        ],
        out_specs=pl.BlockSpec((None, 3 * C, 8, 128), lambda b, j: (b, 0, 0, 0)),
        compiler_params=pltpu.CompilerParams(
            dimension_semantics=("parallel", "arbitrary"),
            vmem_limit_bytes=vmem_limit),
        cost_estimate=cost,
    )(x, t)

    # Tiny weighted combine over (C, 3) scalars in plain JAX (cross-batch /
    # cross-core reduction + global class weights).
    sums = partials.sum(axis=(0, 2, 3)).reshape(C, 3)
    t_sum, nll_sum, cnt_sum = sums[:, 0], sums[:, 1], sums[:, 2]
    w = 1.0 - t_sum / jnp.sum(t_sum)
    return jnp.sum(w * nll_sum) / jnp.sum(w * cnt_sum)


def _reference(logits, target):
    # Pure-JAX reference matching the PyTorch module semantics.
    C = logits.shape[1]
    flat_t = jnp.moveaxis(target, 1, 0).reshape(C, -1)
    w = 1.0 - flat_t.sum(-1) / flat_t.sum()
    labels = jnp.argmax(target, axis=1)                                   # (B,H,W)
    logp = jax.nn.log_softmax(logits.astype(jnp.float32), axis=1)
    nll = -jnp.take_along_axis(logp, labels[:, None], axis=1)[:, 0]       # (B,H,W)
    wpix = w[labels]
    return jnp.sum(wpix * nll) / jnp.sum(wpix)


if __name__ == "__main__":
    key = jax.random.PRNGKey(0)
    k1, k2 = jax.random.split(key)
    B, C, H, W = 2, 4, 16, 16
    logits = jax.random.normal(k1, (B, C, H, W), dtype=jnp.float32)
    labels = jax.random.randint(k2, (B, H, W), 0, C)
    target = jax.nn.one_hot(labels, C, axis=1, dtype=jnp.float32)          # (B,C,H,W)

    loss = jax.block_until_ready(weighted_cross_entropy_loss(logits, target))
    ref = jax.block_until_ready(_reference(logits, target))
    assert jnp.allclose(loss, ref, rtol=1e-5, atol=1e-5), (loss, ref)
    print("KERNEL_OK")
</pallas_src>

<mosaic_0001>
module attributes {stable_mosaic.version = 11 : i64} {
  func.func @_wce_kernel(%arg0: i32, %arg1: i32, %arg2: memref<1x4x8x128xf32, #tpu.memory_space<vmem>>, %arg3: memref<1x4x8x128xf32, #tpu.memory_space<vmem>>, %arg4: memref<1x12x8x128xf32, #tpu.memory_space<vmem>>) attributes {dimension_semantics = [#tpu.dimension_semantics<parallel>, #tpu.dimension_semantics<arbitrary>], iteration_bounds = array<i64: 2, 1>, scalar_prefetch = 0 : i64, scratch_operands = 0 : i64, tpu.core_type = #tpu.core_type<tc>, window_params = [{transform_indices = @transform_0, window_bounds = array<i64: 1, 4, 8, 128>}, {transform_indices = @transform_1, window_bounds = array<i64: 1, 4, 8, 128>}, {transform_indices = @transform_2, window_bounds = array<i64: 1, 12, 8, 128>}]} {
    %c0_i32 = arith.constant 0 : i32
    %0 = arith.cmpi eq, %arg1, %c0_i32 : i32
    %1 = arith.extui %0 : i1 to i32
    %c0_i32_0 = arith.constant 0 : i32
    %2 = arith.cmpi ne, %1, %c0_i32_0 : i32
    scf.if %2 {
      %cst_181 = arith.constant 0.000000e+00 : f32
      %200 = vector.broadcast %cst_181 : f32 to vector<12x8x128xf32>
      %c0_182 = arith.constant 0 : index
      %c0_183 = arith.constant 0 : index
      %c0_184 = arith.constant 0 : index
      %c0_185 = arith.constant 0 : index
      %201 = vector.load %arg4[%c0_182, %c0_183, %c0_184, %c0_185] : memref<1x12x8x128xf32, #tpu.memory_space<vmem>>, vector<1x12x8x128xf32>
      %202 = vector.shape_cast %201 : vector<1x12x8x128xf32> to vector<12x8x128xf32>
      %203 = vector.shape_cast %200 : vector<12x8x128xf32> to vector<1x12x8x128xf32>
      tpu.vector_store %arg4[%c0_182, %c0_183, %c0_184, %c0_185], %203 {strides = array<i32>} : memref<1x12x8x128xf32, #tpu.memory_space<vmem>>, vector<1x12x8x128xf32>,
    } else {
    }
    %3 = tpu.iota {dimensions = array<i32: 0>} : vector<8x128xi32>
    %4 = tpu.iota {dimensions = array<i32: 1>} : vector<8x128xi32>
    %c8_i32 = arith.constant 8 : i32
    %5 = arith.muli %arg1, %c8_i32 : i32
    %6 = vector.broadcast %5 : i32 to vector<8x128xi32>
    %7 = arith.addi %6, %3 : vector<8x128xi32>
    %c128_i32 = arith.constant 128 : i32
    %8 = vector.broadcast %c128_i32 : i32 to vector<8x128xi32>
    %9 = arith.muli %7, %8 : vector<8x128xi32>
    %10 = arith.addi %9, %4 : vector<8x128xi32>
    %c256_i32 = arith.constant 256 : i32
    %11 = vector.broadcast %c256_i32 : i32 to vector<8x128xi32>
    %12 = arith.cmpi slt, %10, %11 : vector<8x128xi32>
    %cst = arith.constant 0xFF800000 : f32
    %13 = vector.broadcast %cst : f32 to vector<8x128xf32>
    %cst_1 = arith.constant 0xFF800000 : f32
    %14 = vector.broadcast %cst_1 : f32 to vector<8x128xf32>
    %c0_i32_2 = arith.constant 0 : i32
    %15 = vector.broadcast %c0_i32_2 : i32 to vector<8x128xi32>
    %c0 = arith.constant 0 : index
    %c0_3 = arith.constant 0 : index
    %c0_4 = arith.constant 0 : index
    %c0_5 = arith.constant 0 : index
    %16 = vector.load %arg2[%c0, %c0_3, %c0_4, %c0_5] : memref<1x4x8x128xf32, #tpu.memory_space<vmem>>, vector<1x1x8x128xf32>
    %17 = vector.shape_cast %16 : vector<1x1x8x128xf32> to vector<8x128xf32>
    %c0_6 = arith.constant 0 : index
    %c0_7 = arith.constant 0 : index
    %c0_8 = arith.constant 0 : index
    %c0_9 = arith.constant 0 : index
    %18 = vector.load %arg3[%c0_6, %c0_7, %c0_8, %c0_9] : memref<1x4x8x128xf32, #tpu.memory_space<vmem>>, vector<1x1x8x128xf32>
    %19 = vector.shape_cast %18 : vector<1x1x8x128xf32> to vector<8x128xf32>
    %20 = arith.cmpf ogt, %19, %14 : vector<8x128xf32>
    %21 = arith.maximumf %13, %17 : vector<8x128xf32>
    %22 = arith.select %20, %19, %14 : vector<8x128xi1>, vector<8x128xf32>
    %c0_i32_10 = arith.constant 0 : i32
    %23 = vector.broadcast %c0_i32_10 : i32 to vector<8x128xi32>
    %24 = arith.select %20, %23, %15 : vector<8x128xi1>, vector<8x128xi32>
    %c0_11 = arith.constant 0 : index
    %c1 = arith.constant 1 : index
    %c0_12 = arith.constant 0 : index
    %c0_13 = arith.constant 0 : index
    %25 = vector.load %arg2[%c0_11, %c1, %c0_12, %c0_13] : memref<1x4x8x128xf32, #tpu.memory_space<vmem>>, vector<1x1x8x128xf32>
    %26 = vector.shape_cast %25 : vector<1x1x8x128xf32> to vector<8x128xf32>
    %c0_14 = arith.constant 0 : index
    %c1_15 = arith.constant 1 : index
    %c0_16 = arith.constant 0 : index
    %c0_17 = arith.constant 0 : index
    %27 = vector.load %arg3[%c0_14, %c1_15, %c0_16, %c0_17] : memref<1x4x8x128xf32, #tpu.memory_space<vmem>>, vector<1x1x8x128xf32>
    %28 = vector.shape_cast %27 : vector<1x1x8x128xf32> to vector<8x128xf32>
    %29 = arith.cmpf ogt, %28, %22 : vector<8x128xf32>
    %30 = arith.maximumf %21, %26 : vector<8x128xf32>
    %31 = arith.select %29, %28, %22 : vector<8x128xi1>, vector<8x128xf32>
    %c1_i32 = arith.constant 1 : i32
    %32 = vector.broadcast %c1_i32 : i32 to vector<8x128xi32>
    %33 = arith.select %29, %32, %24 : vector<8x128xi1>, vector<8x128xi32>
    %c0_18 = arith.constant 0 : index
    %c2 = arith.constant 2 : index
    %c0_19 = arith.constant 0 : index
    %c0_20 = arith.constant 0 : index
    %34 = vector.load %arg2[%c0_18, %c2, %c0_19, %c0_20] : memref<1x4x8x128xf32, #tpu.memory_space<vmem>>, vector<1x1x8x128xf32>
    %35 = vector.shape_cast %34 : vector<1x1x8x128xf32> to vector<8x128xf32>
    %c0_21 = arith.constant 0 : index
    %c2_22 = arith.constant 2 : index
    %c0_23 = arith.constant 0 : index
    %c0_24 = arith.constant 0 : index
    %36 = vector.load %arg3[%c0_21, %c2_22, %c0_23, %c0_24] : memref<1x4x8x128xf32, #tpu.memory_space<vmem>>, vector<1x1x8x128xf32>
    %37 = vector.shape_cast %36 : vector<1x1x8x128xf32> to vector<8x128xf32>
    %38 = arith.cmpf ogt, %37, %31 : vector<8x128xf32>
    %39 = arith.maximumf %30, %35 : vector<8x128xf32>
    %40 = arith.select %38, %37, %31 : vector<8x128xi1>, vector<8x128xf32>
    %c2_i32 = arith.constant 2 : i32
    %41 = vector.broadcast %c2_i32 : i32 to vector<8x128xi32>
    %42 = arith.select %38, %41, %33 : vector<8x128xi1>, vector<8x128xi32>
    %c0_25 = arith.constant 0 : index
    %c3 = arith.constant 3 : index
    %c0_26 = arith.constant 0 : index
    %c0_27 = arith.constant 0 : index
    %43 = vector.load %arg2[%c0_25, %c3, %c0_26, %c0_27] : memref<1x4x8x128xf32, #tpu.memory_space<vmem>>, vector<1x1x8x128xf32>
    %44 = vector.shape_cast %43 : vector<1x1x8x128xf32> to vector<8x128xf32>
    %c0_28 = arith.constant 0 : index
    %c3_29 = arith.constant 3 : index
    %c0_30 = arith.constant 0 : index
    %c0_31 = arith.constant 0 : index
    %45 = vector.load %arg3[%c0_28, %c3_29, %c0_30, %c0_31] : memref<1x4x8x128xf32, #tpu.memory_space<vmem>>, vector<1x1x8x128xf32>
    %46 = vector.shape_cast %45 : vector<1x1x8x128xf32> to vector<8x128xf32>
    %47 = arith.cmpf ogt, %46, %40 : vector<8x128xf32>
    %48 = arith.maximumf %39, %44 : vector<8x128xf32>
    %c3_i32 = arith.constant 3 : i32
    %49 = vector.broadcast %c3_i32 : i32 to vector<8x128xi32>
    %50 = arith.select %47, %49, %42 : vector<8x128xi1>, vector<8x128xi32>
    %c-1_i32 = arith.constant -1 : i32
    %51 = vector.broadcast %c-1_i32 : i32 to vector<8x128xi32>
    %52 = arith.select %12, %50, %51 : vector<8x128xi1>, vector<8x128xi32>
    %cst_32 = arith.constant 0.000000e+00 : f32
    %53 = vector.broadcast %cst_32 : f32 to vector<8x128xf32>
    %c0_33 = arith.constant 0 : index
    %c0_34 = arith.constant 0 : index
    %c0_35 = arith.constant 0 : index
    %c0_36 = arith.constant 0 : index
    %54 = vector.load %arg2[%c0_33, %c0_34, %c0_35, %c0_36] : memref<1x4x8x128xf32, #tpu.memory_space<vmem>>, vector<1x1x8x128xf32>
    %55 = vector.shape_cast %54 : vector<1x1x8x128xf32> to vector<8x128xf32>
    %56 = arith.subf %55, %48 : vector<8x128xf32>
    %57 = math.exp %56 : vector<8x128xf32>
    %58 = arith.addf %53, %57 : vector<8x128xf32>
    %c0_37 = arith.constant 0 : index
    %c0_38 = arith.constant 0 : index
    %c0_39 = arith.constant 0 : index
    %c0_40 = arith.constant 0 : index
    %59 = vector.load %arg3[%c0_37, %c0_38, %c0_39, %c0_40] : memref<1x4x8x128xf32, #tpu.memory_space<vmem>>, vector<1x1x8x128xf32>
    %60 = vector.shape_cast %59 : vector<1x1x8x128xf32> to vector<8x128xf32>
    %c0_i32_41 = arith.constant 0 : i32
    %61 = vector.broadcast %c0_i32_41 : i32 to vector<8x128xi32>
    %62 = arith.cmpi eq, %52, %61 : vector<8x128xi32>
    %63 = arith.extui %62 : vector<8x128xi1> to vector<8x128xi32>
    %64 = arith.sitofp %63 : vector<8x128xi32> to vector<8x128xf32>
    %c0_42 = arith.constant 0 : index
    %c0_43 = arith.constant 0 : index
    %c0_44 = arith.constant 0 : index
    %c0_45 = arith.constant 0 : index
    %65 = vector.load %arg4[%c0_42, %c0_43, %c0_44, %c0_45] : memref<1x12x8x128xf32, #tpu.memory_space<vmem>>, vector<1x1x8x128xf32>
    %66 = vector.shape_cast %65 : vector<1x1x8x128xf32> to vector<8x128xf32>
    %67 = arith.addf %66, %60 : vector<8x128xf32>
    %c0_46 = arith.constant 0 : index
    %c0_47 = arith.constant 0 : index
    %c0_48 = arith.constant 0 : index
    %c0_49 = arith.constant 0 : index
    %68 = vector.load %arg4[%c0_46, %c0_47, %c0_48, %c0_49] : memref<1x12x8x128xf32, #tpu.memory_space<vmem>>, vector<1x1x8x128xf32>
    %69 = vector.shape_cast %68 : vector<1x1x8x128xf32> to vector<8x128xf32>
    %70 = vector.shape_cast %67 : vector<8x128xf32> to vector<1x1x8x128xf32>
    tpu.vector_store %arg4[%c0_46, %c0_47, %c0_48, %c0_49], %70 {strides = array<i32>} : memref<1x12x8x128xf32, #tpu.memory_space<vmem>>, vector<1x1x8x128xf32>,
    %c0_50 = arith.constant 0 : index
    %c2_51 = arith.constant 2 : index
    %c0_52 = arith.constant 0 : index
    %c0_53 = arith.constant 0 : index
    %71 = vector.load %arg4[%c0_50, %c2_51, %c0_52, %c0_53] : memref<1x12x8x128xf32, #tpu.memory_space<vmem>>, vector<1x1x8x128xf32>
    %72 = vector.shape_cast %71 : vector<1x1x8x128xf32> to vector<8x128xf32>
    %73 = arith.addf %72, %64 : vector<8x128xf32>
    %c0_54 = arith.constant 0 : index
    %c2_55 = arith.constant 2 : index
    %c0_56 = arith.constant 0 : index
    %c0_57 = arith.constant 0 : index
    %74 = vector.load %arg4[%c0_54, %c2_55, %c0_56, %c0_57] : memref<1x12x8x128xf32, #tpu.memory_space<vmem>>, vector<1x1x8x128xf32>
    %75 = vector.shape_cast %74 : vector<1x1x8x128xf32> to vector<8x128xf32>
    %76 = vector.shape_cast %73 : vector<8x128xf32> to vector<1x1x8x128xf32>
    tpu.vector_store %arg4[%c0_54, %c2_55, %c0_56, %c0_57], %76 {strides = array<i32>} : memref<1x12x8x128xf32, #tpu.memory_space<vmem>>, vector<1x1x8x128xf32>,
    %c0_58 = arith.constant 0 : index
    %c1_59 = arith.constant 1 : index
    %c0_60 = arith.constant 0 : index
    %c0_61 = arith.constant 0 : index
    %77 = vector.load %arg2[%c0_58, %c1_59, %c0_60, %c0_61] : memref<1x4x8x128xf32, #tpu.memory_space<vmem>>, vector<1x1x8x128xf32>
    %78 = vector.shape_cast %77 : vector<1x1x8x128xf32> to vector<8x128xf32>
    %79 = arith.subf %78, %48 : vector<8x128xf32>
    %80 = math.exp %79 : vector<8x128xf32>
    %81 = arith.addf %58, %80 : vector<8x128xf32>
    %c0_62 = arith.constant 0 : index
    %c1_63 = arith.constant 1 : index
    %c0_64 = arith.constant 0 : index
    %c0_65 = arith.constant 0 : index
    %82 = vector.load %arg3[%c0_62, %c1_63, %c0_64, %c0_65] : memref<1x4x8x128xf32, #tpu.memory_space<vmem>>, vector<1x1x8x128xf32>
    %83 = vector.shape_cast %82 : vector<1x1x8x128xf32> to vector<8x128xf32>
    %c1_i32_66 = arith.constant 1 : i32
    %84 = vector.broadcast %c1_i32_66 : i32 to vector<8x128xi32>
    %85 = arith.cmpi eq, %52, %84 : vector<8x128xi32>
    %86 = arith.extui %85 : vector<8x128xi1> to vector<8x128xi32>
    %87 = arith.sitofp %86 : vector<8x128xi32> to vector<8x128xf32>
    %c0_67 = arith.constant 0 : index
    %c3_68 = arith.constant 3 : index
    %c0_69 = arith.constant 0 : index
    %c0_70 = arith.constant 0 : index
    %88 = vector.load %arg4[%c0_67, %c3_68, %c0_69, %c0_70] : memref<1x12x8x128xf32, #tpu.memory_space<vmem>>, vector<1x1x8x128xf32>
    %89 = vector.shape_cast %88 : vector<1x1x8x128xf32> to vector<8x128xf32>
    %90 = arith.addf %89, %83 : vector<8x128xf32>
    %c0_71 = arith.constant 0 : index
    %c3_72 = arith.constant 3 : index
    %c0_73 = arith.constant 0 : index
    %c0_74 = arith.constant 0 : index
    %91 = vector.load %arg4[%c0_71, %c3_72, %c0_73, %c0_74] : memref<1x12x8x128xf32, #tpu.memory_space<vmem>>, vector<1x1x8x128xf32>
    %92 = vector.shape_cast %91 : vector<1x1x8x128xf32> to vector<8x128xf32>
    %93 = vector.shape_cast %90 : vector<8x128xf32> to vector<1x1x8x128xf32>
    tpu.vector_store %arg4[%c0_71, %c3_72, %c0_73, %c0_74], %93 {strides = array<i32>} : memref<1x12x8x128xf32, #tpu.memory_space<vmem>>, vector<1x1x8x128xf32>,
    %c0_75 = arith.constant 0 : index
    %c5 = arith.constant 5 : index
    %c0_76 = arith.constant 0 : index
    %c0_77 = arith.constant 0 : index
    %94 = vector.load %arg4[%c0_75, %c5, %c0_76, %c0_77] : memref<1x12x8x128xf32, #tpu.memory_space<vmem>>, vector<1x1x8x128xf32>
    %95 = vector.shape_cast %94 : vector<1x1x8x128xf32> to vector<8x128xf32>
    %96 = arith.addf %95, %87 : vector<8x128xf32>
    %c0_78 = arith.constant 0 : index
    %c5_79 = arith.constant 5 : index
    %c0_80 = arith.constant 0 : index
    %c0_81 = arith.constant 0 : index
    %97 = vector.load %arg4[%c0_78, %c5_79, %c0_80, %c0_81] : memref<1x12x8x128xf32, #tpu.memory_space<vmem>>, vector<1x1x8x128xf32>
    %98 = vector.shape_cast %97 : vector<1x1x8x128xf32> to vector<8x128xf32>
    %99 = vector.shape_cast %96 : vector<8x128xf32> to vector<1x1x8x128xf32>
    tpu.vector_store %arg4[%c0_78, %c5_79, %c0_80, %c0_81], %99 {strides = array<i32>} : memref<1x12x8x128xf32, #tpu.memory_space<vmem>>, vector<1x1x8x128xf32>,
    %c0_82 = arith.constant 0 : index
    %c2_83 = arith.constant 2 : index
    %c0_84 = arith.constant 0 : index
    %c0_85 = arith.constant 0 : index
    %100 = vector.load %arg2[%c0_82, %c2_83, %c0_84, %c0_85] : memref<1x4x8x128xf32, #tpu.memory_space<vmem>>, vector<1x1x8x128xf32>
    %101 = vector.shape_cast %100 : vector<1x1x8x128xf32> to vector<8x128xf32>
    %102 = arith.subf %101, %48 : vector<8x128xf32>
    %103 = math.exp %102 : vector<8x128xf32>
    %104 = arith.addf %81, %103 : vector<8x128xf32>
    %c0_86 = arith.constant 0 : index
    %c2_87 = arith.constant 2 : index
    %c0_88 = arith.constant 0 : index
    %c0_89 = arith.constant 0 : index
    %105 = vector.load %arg3[%c0_86, %c2_87, %c0_88, %c0_89] : memref<1x4x8x128xf32, #tpu.memory_space<vmem>>, vector<1x1x8x128xf32>
    %106 = vector.shape_cast %105 : vector<1x1x8x128xf32> to vector<8x128xf32>
    %c2_i32_90 = arith.constant 2 : i32
    %107 = vector.broadcast %c2_i32_90 : i32 to vector<8x128xi32>
    %108 = arith.cmpi eq, %52, %107 : vector<8x128xi32>
    %109 = arith.extui %108 : vector<8x128xi1> to vector<8x128xi32>
    %110 = arith.sitofp %109 : vector<8x128xi32> to vector<8x128xf32>
    %c0_91 = arith.constant 0 : index
    %c6 = arith.constant 6 : index
    %c0_92 = arith.constant 0 : index
    %c0_93 = arith.constant 0 : index
    %111 = vector.load %arg4[%c0_91, %c6, %c0_92, %c0_93] : memref<1x12x8x128xf32, #tpu.memory_space<vmem>>, vector<1x1x8x128xf32>
    %112 = vector.shape_cast %111 : vector<1x1x8x128xf32> to vector<8x128xf32>
    %113 = arith.addf %112, %106 : vector<8x128xf32>
    %c0_94 = arith.constant 0 : index
    %c6_95 = arith.constant 6 : index
    %c0_96 = arith.constant 0 : index
    %c0_97 = arith.constant 0 : index
    %114 = vector.load %arg4[%c0_94, %c6_95, %c0_96, %c0_97] : memref<1x12x8x128xf32, #tpu.memory_space<vmem>>, vector<1x1x8x128xf32>
    %115 = vector.shape_cast %114 : vector<1x1x8x128xf32> to vector<8x128xf32>
    %116 = vector.shape_cast %113 : vector<8x128xf32> to vector<1x1x8x128xf32>
    tpu.vector_store %arg4[%c0_94, %c6_95, %c0_96, %c0_97], %116 {strides = array<i32>} : memref<1x12x8x128xf32, #tpu.memory_space<vmem>>, vector<1x1x8x128xf32>,
    %c0_98 = arith.constant 0 : index
    %c8 = arith.constant 8 : index
    %c0_99 = arith.constant 0 : index
    %c0_100 = arith.constant 0 : index
    %117 = vector.load %arg4[%c0_98, %c8, %c0_99, %c0_100] : memref<1x12x8x128xf32, #tpu.memory_space<vmem>>, vector<1x1x8x128xf32>
    %118 = vector.shape_cast %117 : vector<1x1x8x128xf32> to vector<8x128xf32>
    %119 = arith.addf %118, %110 : vector<8x128xf32>
    %c0_101 = arith.constant 0 : index
    %c8_102 = arith.constant 8 : index
    %c0_103 = arith.constant 0 : index
    %c0_104 = arith.constant 0 : index
    %120 = vector.load %arg4[%c0_101, %c8_102, %c0_103, %c0_104] : memref<1x12x8x128xf32, #tpu.memory_space<vmem>>, vector<1x1x8x128xf32>
    %121 = vector.shape_cast %120 : vector<1x1x8x128xf32> to vector<8x128xf32>
    %122 = vector.shape_cast %119 : vector<8x128xf32> to vector<1x1x8x128xf32>
    tpu.vector_store %arg4[%c0_101, %c8_102, %c0_103, %c0_104], %122 {strides = array<i32>} : memref<1x12x8x128xf32, #tpu.memory_space<vmem>>, vector<1x1x8x128xf32>,
    %c0_105 = arith.constant 0 : index
    %c3_106 = arith.constant 3 : index
    %c0_107 = arith.constant 0 : index
    %c0_108 = arith.constant 0 : index
    %123 = vector.load %arg2[%c0_105, %c3_106, %c0_107, %c0_108] : memref<1x4x8x128xf32, #tpu.memory_space<vmem>>, vector<1x1x8x128xf32>
    %124 = vector.shape_cast %123 : vector<1x1x8x128xf32> to vector<8x128xf32>
    %125 = arith.subf %124, %48 : vector<8x128xf32>
    %126 = math.exp %125 : vector<8x128xf32>
    %127 = arith.addf %104, %126 : vector<8x128xf32>
    %c0_109 = arith.constant 0 : index
    %c3_110 = arith.constant 3 : index
    %c0_111 = arith.constant 0 : index
    %c0_112 = arith.constant 0 : index
    %128 = vector.load %arg3[%c0_109, %c3_110, %c0_111, %c0_112] : memref<1x4x8x128xf32, #tpu.memory_space<vmem>>, vector<1x1x8x128xf32>
    %129 = vector.shape_cast %128 : vector<1x1x8x128xf32> to vector<8x128xf32>
    %c3_i32_113 = arith.constant 3 : i32
    %130 = vector.broadcast %c3_i32_113 : i32 to vector<8x128xi32>
    %131 = arith.cmpi eq, %52, %130 : vector<8x128xi32>
    %132 = arith.extui %131 : vector<8x128xi1> to vector<8x128xi32>
    %133 = arith.sitofp %132 : vector<8x128xi32> to vector<8x128xf32>
    %c0_114 = arith.constant 0 : index
    %c9 = arith.constant 9 : index
    %c0_115 = arith.constant 0 : index
    %c0_116 = arith.constant 0 : index
    %134 = vector.load %arg4[%c0_114, %c9, %c0_115, %c0_116] : memref<1x12x8x128xf32, #tpu.memory_space<vmem>>, vector<1x1x8x128xf32>
    %135 = vector.shape_cast %134 : vector<1x1x8x128xf32> to vector<8x128xf32>
    %136 = arith.addf %135, %129 : vector<8x128xf32>
    %c0_117 = arith.constant 0 : index
    %c9_118 = arith.constant 9 : index
    %c0_119 = arith.constant 0 : index
    %c0_120 = arith.constant 0 : index
    %137 = vector.load %arg4[%c0_117, %c9_118, %c0_119, %c0_120] : memref<1x12x8x128xf32, #tpu.memory_space<vmem>>, vector<1x1x8x128xf32>
    %138 = vector.shape_cast %137 : vector<1x1x8x128xf32> to vector<8x128xf32>
    %139 = vector.shape_cast %136 : vector<8x128xf32> to vector<1x1x8x128xf32>
    tpu.vector_store %arg4[%c0_117, %c9_118, %c0_119, %c0_120], %139 {strides = array<i32>} : memref<1x12x8x128xf32, #tpu.memory_space<vmem>>, vector<1x1x8x128xf32>,
    %c0_121 = arith.constant 0 : index
    %c11 = arith.constant 11 : index
    %c0_122 = arith.constant 0 : index
    %c0_123 = arith.constant 0 : index
    %140 = vector.load %arg4[%c0_121, %c11, %c0_122, %c0_123] : memref<1x12x8x128xf32, #tpu.memory_space<vmem>>, vector<1x1x8x128xf32>
    %141 = vector.shape_cast %140 : vector<1x1x8x128xf32> to vector<8x128xf32>
    %142 = arith.addf %141, %133 : vector<8x128xf32>
    %c0_124 = arith.constant 0 : index
    %c11_125 = arith.constant 11 : index
    %c0_126 = arith.constant 0 : index
    %c0_127 = arith.constant 0 : index
    %143 = vector.load %arg4[%c0_124, %c11_125, %c0_126, %c0_127] : memref<1x12x8x128xf32, #tpu.memory_space<vmem>>, vector<1x1x8x128xf32>
    %144 = vector.shape_cast %143 : vector<1x1x8x128xf32> to vector<8x128xf32>
    %145 = vector.shape_cast %142 : vector<8x128xf32> to vector<1x1x8x128xf32>
    tpu.vector_store %arg4[%c0_124, %c11_125, %c0_126, %c0_127], %145 {strides = array<i32>} : memref<1x12x8x128xf32, #tpu.memory_space<vmem>>, vector<1x1x8x128xf32>,
    %146 = math.log %127 : vector<8x128xf32>
    %147 = arith.addf %48, %146 : vector<8x128xf32>
    %c0_i32_128 = arith.constant 0 : i32
    %148 = vector.broadcast %c0_i32_128 : i32 to vector<8x128xi32>
    %149 = arith.cmpi eq, %52, %148 : vector<8x128xi32>
    %c0_129 = arith.constant 0 : index
    %c0_130 = arith.constant 0 : index
    %c0_131 = arith.constant 0 : index
    %c0_132 = arith.constant 0 : index
    %150 = vector.load %arg2[%c0_129, %c0_130, %c0_131, %c0_132] : memref<1x4x8x128xf32, #tpu.memory_space<vmem>>, vector<1x1x8x128xf32>
    %151 = vector.shape_cast %150 : vector<1x1x8x128xf32> to vector<8x128xf32>
    %152 = arith.subf %147, %151 : vector<8x128xf32>
    %cst_133 = arith.constant 0.000000e+00 : f32
    %153 = vector.broadcast %cst_133 : f32 to vector<8x128xf32>
    %154 = arith.select %149, %152, %153 : vector<8x128xi1>, vector<8x128xf32>
    %c0_134 = arith.constant 0 : index
    %c1_135 = arith.constant 1 : index
    %c0_136 = arith.constant 0 : index
    %c0_137 = arith.constant 0 : index
    %155 = vector.load %arg4[%c0_134, %c1_135, %c0_136, %c0_137] : memref<1x12x8x128xf32, #tpu.memory_space<vmem>>, vector<1x1x8x128xf32>
    %156 = vector.shape_cast %155 : vector<1x1x8x128xf32> to vector<8x128xf32>
    %157 = arith.addf %156, %154 : vector<8x128xf32>
    %c0_138 = arith.constant 0 : index
    %c1_139 = arith.constant 1 : index
    %c0_140 = arith.constant 0 : index
    %c0_141 = arith.constant 0 : index
    %158 = vector.load %arg4[%c0_138, %c1_139, %c0_140, %c0_141] : memref<1x12x8x128xf32, #tpu.memory_space<vmem>>, vector<1x1x8x128xf32>
    %159 = vector.shape_cast %158 : vector<1x1x8x128xf32> to vector<8x128xf32>
    %160 = vector.shape_cast %157 : vector<8x128xf32> to vector<1x1x8x128xf32>
    tpu.vector_store %arg4[%c0_138, %c1_139, %c0_140, %c0_141], %160 {strides = array<i32>} : memref<1x12x8x128xf32, #tpu.memory_space<vmem>>, vector<1x1x8x128xf32>,
    %c1_i32_142 = arith.constant 1 : i32
    %161 = vector.broadcast %c1_i32_142 : i32 to vector<8x128xi32>
    %162 = arith.cmpi eq, %52, %161 : vector<8x128xi32>
    %c0_143 = arith.constant 0 : index
    %c1_144 = arith.constant 1 : index
    %c0_145 = arith.constant 0 : index
    %c0_146 = arith.constant 0 : index
    %163 = vector.load %arg2[%c0_143, %c1_144, %c0_145, %c0_146] : memref<1x4x8x128xf32, #tpu.memory_space<vmem>>, vector<1x1x8x128xf32>
    %164 = vector.shape_cast %163 : vector<1x1x8x128xf32> to vector<8x128xf32>
    %165 = arith.subf %147, %164 : vector<8x128xf32>
    %cst_147 = arith.constant 0.000000e+00 : f32
    %166 = vector.broadcast %cst_147 : f32 to vector<8x128xf32>
    %167 = arith.select %162, %165, %166 : vector<8x128xi1>, vector<8x128xf32>
    %c0_148 = arith.constant 0 : index
    %c4 = arith.constant 4 : index
    %c0_149 = arith.constant 0 : index
    %c0_150 = arith.constant 0 : index
    %168 = vector.load %arg4[%c0_148, %c4, %c0_149, %c0_150] : memref<1x12x8x128xf32, #tpu.memory_space<vmem>>, vector<1x1x8x128xf32>
    %169 = vector.shape_cast %168 : vector<1x1x8x128xf32> to vector<8x128xf32>
    %170 = arith.addf %169, %167 : vector<8x128xf32>
    %c0_151 = arith.constant 0 : index
    %c4_152 = arith.constant 4 : index
    %c0_153 = arith.constant 0 : index
    %c0_154 = arith.constant 0 : index
    %171 = vector.load %arg4[%c0_151, %c4_152, %c0_153, %c0_154] : memref<1x12x8x128xf32, #tpu.memory_space<vmem>>, vector<1x1x8x128xf32>
    %172 = vector.shape_cast %171 : vector<1x1x8x128xf32> to vector<8x128xf32>
    %173 = vector.shape_cast %170 : vector<8x128xf32> to vector<1x1x8x128xf32>
    tpu.vector_store %arg4[%c0_151, %c4_152, %c0_153, %c0_154], %173 {strides = array<i32>} : memref<1x12x8x128xf32, #tpu.memory_space<vmem>>, vector<1x1x8x128xf32>,
    %c2_i32_155 = arith.constant 2 : i32
    %174 = vector.broadcast %c2_i32_155 : i32 to vector<8x128xi32>
    %175 = arith.cmpi eq, %52, %174 : vector<8x128xi32>
    %c0_156 = arith.constant 0 : index
    %c2_157 = arith.constant 2 : index
    %c0_158 = arith.constant 0 : index
    %c0_159 = arith.constant 0 : index
    %176 = vector.load %arg2[%c0_156, %c2_157, %c0_158, %c0_159] : memref<1x4x8x128xf32, #tpu.memory_space<vmem>>, vector<1x1x8x128xf32>
    %177 = vector.shape_cast %176 : vector<1x1x8x128xf32> to vector<8x128xf32>
    %178 = arith.subf %147, %177 : vector<8x128xf32>
    %cst_160 = arith.constant 0.000000e+00 : f32
    %179 = vector.broadcast %cst_160 : f32 to vector<8x128xf32>
    %180 = arith.select %175, %178, %179 : vector<8x128xi1>, vector<8x128xf32>
    %c0_161 = arith.constant 0 : index
    %c7 = arith.constant 7 : index
    %c0_162 = arith.constant 0 : index
    %c0_163 = arith.constant 0 : index
    %181 = vector.load %arg4[%c0_161, %c7, %c0_162, %c0_163] : memref<1x12x8x128xf32, #tpu.memory_space<vmem>>, vector<1x1x8x128xf32>
    %182 = vector.shape_cast %181 : vector<1x1x8x128xf32> to vector<8x128xf32>
    %183 = arith.addf %182, %180 : vector<8x128xf32>
    %c0_164 = arith.constant 0 : index
    %c7_165 = arith.constant 7 : index
    %c0_166 = arith.constant 0 : index
    %c0_167 = arith.constant 0 : index
    %184 = vector.load %arg4[%c0_164, %c7_165, %c0_166, %c0_167] : memref<1x12x8x128xf32, #tpu.memory_space<vmem>>, vector<1x1x8x128xf32>
    %185 = vector.shape_cast %184 : vector<1x1x8x128xf32> to vector<8x128xf32>
    %186 = vector.shape_cast %183 : vector<8x128xf32> to vector<1x1x8x128xf32>
    tpu.vector_store %arg4[%c0_164, %c7_165, %c0_166, %c0_167], %186 {strides = array<i32>} : memref<1x12x8x128xf32, #tpu.memory_space<vmem>>, vector<1x1x8x128xf32>,
    %c3_i32_168 = arith.constant 3 : i32
    %187 = vector.broadcast %c3_i32_168 : i32 to vector<8x128xi32>
    %188 = arith.cmpi eq, %52, %187 : vector<8x128xi32>
    %c0_169 = arith.constant 0 : index
    %c3_170 = arith.constant 3 : index
    %c0_171 = arith.constant 0 : index
    %c0_172 = arith.constant 0 : index
    %189 = vector.load %arg2[%c0_169, %c3_170, %c0_171, %c0_172] : memref<1x4x8x128xf32, #tpu.memory_space<vmem>>, vector<1x1x8x128xf32>
    %190 = vector.shape_cast %189 : vector<1x1x8x128xf32> to vector<8x128xf32>
    %191 = arith.subf %147, %190 : vector<8x128xf32>
    %cst_173 = arith.constant 0.000000e+00 : f32
    %192 = vector.broadcast %cst_173 : f32 to vector<8x128xf32>
    %193 = arith.select %188, %191, %192 : vector<8x128xi1>, vector<8x128xf32>
    %c0_174 = arith.constant 0 : index
    %c10 = arith.constant 10 : index
    %c0_175 = arith.constant 0 : index
    %c0_176 = arith.constant 0 : index
    %194 = vector.load %arg4[%c0_174, %c10, %c0_175, %c0_176] : memref<1x12x8x128xf32, #tpu.memory_space<vmem>>, vector<1x1x8x128xf32>
    %195 = vector.shape_cast %194 : vector<1x1x8x128xf32> to vector<8x128xf32>
    %196 = arith.addf %195, %193 : vector<8x128xf32>
    %c0_177 = arith.constant 0 : index
    %c10_178 = arith.constant 10 : index
    %c0_179 = arith.constant 0 : index
    %c0_180 = arith.constant 0 : index
    %197 = vector.load %arg4[%c0_177, %c10_178, %c0_179, %c0_180] : memref<1x12x8x128xf32, #tpu.memory_space<vmem>>, vector<1x1x8x128xf32>
    %198 = vector.shape_cast %197 : vector<1x1x8x128xf32> to vector<8x128xf32>
    %199 = vector.shape_cast %196 : vector<8x128xf32> to vector<1x1x8x128xf32>
    tpu.vector_store %arg4[%c0_177, %c10_178, %c0_179, %c0_180], %199 {strides = array<i32>} : memref<1x12x8x128xf32, #tpu.memory_space<vmem>>, vector<1x1x8x128xf32>,
    return
  }
  func.func @transform_0(%arg0: i32, %arg1: i32) -> (i32, i32, i32, i32) {
    %c0_i32 = arith.constant 0 : i32
    %c0_i32_0 = arith.constant 0 : i32
    %c0_i32_1 = arith.constant 0 : i32
    return %arg0, %c0_i32, %arg1, %c0_i32_0 : i32, i32, i32, i32
  }
  func.func @transform_1(%arg0: i32, %arg1: i32) -> (i32, i32, i32, i32) {
    %c0_i32 = arith.constant 0 : i32
    %c0_i32_0 = arith.constant 0 : i32
    %c0_i32_1 = arith.constant 0 : i32
    return %arg0, %c0_i32, %arg1, %c0_i32_0 : i32, i32, i32, i32
  }
  func.func @transform_2(%arg0: i32, %arg1: i32) -> (i32, i32, i32, i32) {
    %c0_i32 = arith.constant 0 : i32
    %c0_i32_0 = arith.constant 0 : i32
    %c0_i32_1 = arith.constant 0 : i32
    %c0_i32_2 = arith.constant 0 : i32
    return %arg0, %c0_i32, %c0_i32_0, %c0_i32_1 : i32, i32, i32, i32
  }
}

</mosaic_0001>

<bundles_post_ra>
// kernel: tpu_custom_call.1
= control target key start
LH: loop header
LB: loop body
LE: loop exit
PB: predicated region body
PF: predicated region fallthrough
CT: control target
= control target key end

     0   :  { %7 = vsyncpa [#allocation3], 0  ;;  %s991_s0 = inlined_call_operand.hbm [shape: f32[2,4,8,128], index: 0, kind: input, shape index: {}]   ;;  %s992_s1 = inlined_call_operand.hbm [shape: f32[2,4,8,128], index: 1, kind: input, shape index: {}]   ;;  %s993_s2 = inlined_call_operand.hbm [shape: f32[2,12,8,128], index: 2, kind: output, shape index: {}]  }
   0x1   :  { %9 = vsyncpa [#allocation3 + $0x1], 0 }
   0x2   :  { %10 = vsyncpa [#allocation6], 0 }
   0x3   :  { %12 = vsyncpa [#allocation6 + $0x1], 0 }
   0x4   :  { %13 = vsyncpa [#allocation4], 0 }
   0x5   :  { %15 = vsyncpa [#allocation4 + $0x1], 0  ;;  %s811_s9 = smov 0   ;;  %s813_s10 = smov 0  }
   0x6   :  { %s815_s11 = smov 0   ;;  %s817_s12 = smov 0  }
   0x7   :  { %s819_s13 = smov 0   ;;  %s821_s14 = smov 0  }
   0x8 LB: > { %s498_s15 = sadd.s32 4294967295, %s788_s14   ;;  %s499_s16 = sadd.s32 4294967294, %s788_s14   ;;  %s788_s14 = sphi %s821_s14, %s21_s14   ;;  %s784_s13 = sphi %s819_s13, %s1003_s13   ;;  %s780_s12 = sphi %s817_s12, %s1002_s12   ;;  %s776_s11 = sphi %s815_s11, %s1001_s11   ;;  %s772_s10 = sphi %s813_s10, %s1000_s10   ;;  %s768_s9 = sphi %s811_s9, %s999_s9  }
   0x9   : > { %s33_s17 = sadd.s32 1, %s784_s13  ;;  %s42_s18 = sadd.s32 1, %s776_s11 }
   0xa   : > { %p35_p0 = scmp.ge.s32.totalorder %s33_s17, 2  ;;  %p49_p1 = scmp.ne.s32.totalorder %s776_s11, %s772_s10 }
   0xb   : > { %p50_p2 = scmp.eq.s32.totalorder %s788_s14, 0  ;;  %p55_p3 = scmp.ne.s32.totalorder %s772_s10, %s768_s9 }
   0xc   : > { %s1005_s17 = smov (%p35_p0, %s33_s17), 0  ;;  %p56_p5 = scmp.eq.s32.totalorder %s498_s15, 0 }
   0xd   : > { %p852_p4 = por %p50_p2, %p49_p1  ;;  %s37_s20 = ssub.s32 %s784_s13, %s1005_s17 }
   0xe   : > { %p107_p6 = scmp.eq.s32.totalorder %s498_s15, 1  ;;  %p40_p7 = scmp.eq.s32.totalorder %s37_s20, 0 }
   0xf   : > { %p858_p8 = por %p56_p5, %p55_p3  ;;  %p113_p10 = scmp.eq.s32.totalorder %s499_s16, 1 }
  0x10   : > { %p862_p9 = por %p107_p6, %p49_p1  ;;  %p501_p12 = scmp.ge.s32.totalorder %s788_s14, 2 }
  0x11   : > { %s867_s23 = scalar_select %p40_p7, %s776_s11, %s42_s18  }
  0x12   : > { %p869_p11 = por %p113_p10, %p55_p3  ;;  %p576_p13 = scmp.lt.s32.totalorder %s788_s14, 2 }
  0x13   : > { %s876_s25 = sand.u32 1, %s776_s11   ;;  %s555_s27 = sshll.u32 %s784_s13, 5 }
  0x14   : > { %s502_s26 = sshll.u32 %s876_s25, 5  ;;  %s143_s30 = scalar_lea.hbm %s991_s0, %s555_s27 }
  0x15   : > { %s137_s3 = scalar_lea.vmem [#allocation2], %s502_s26  ;;  %s144_s5 = sshll.u32 %s143_s30, 4  ;;  %s145_s5 = int_to_ptr.hbm [resolvable:$true] %s144_s5 }
  0x16   : > { %s146_s4 = sshll.u32 %s137_s3, 4  ;;  %p885_p0 = pnand %p576_p13, %p852_p4  ;;  %s147_s4 = int_to_ptr.vmem [resolvable:$true] %s146_s4 }
  0x17   : > { %p508_p1 = scmp.ge.s32.totalorder %s788_s14, 1  ;;  %s134_s7 = scalar_lea.sflag [#allocation3], %s876_s25 }
  0x18   : > { %s790_s8 = smov 128   ;;  %s791_s15 = smov 8  }
  0x19   : > { %568 = dma.hbm_to_vmem [thread:$0]  (!%p885_p0), %s145_s5, 512, %s147_s4, %s134_s7, %s790_s8, %s790_s8, %s791_s15  }
  0x1a   : > { %p177_p2 = scmp.lt.s32.totalorder %s788_s14, 3  ;;  %s166_s20 = scalar_lea.hbm %s992_s1, %s555_s27 }
  0x1b   : > { %s167_s28 = sshll.u32 %s166_s20, 4  ;;  %s160_s19 = scalar_lea.vmem [#allocation5], %s502_s26  ;;  %s168_s28 = int_to_ptr.hbm [resolvable:$true] %s167_s28 }
  0x1c   : > { %p178_p3 = pnand %p508_p1, %p177_p2  ;;  %s169_s29 = sshll.u32 %s160_s19, 4  ;;  %s170_s29 = int_to_ptr.vmem [resolvable:$true] %s169_s29 }
  0x1d   : > { %s157_s30 = scalar_lea.sflag [#allocation6], %s876_s25  ;;  %s901_s3 = sand.u32 (!%p178_p3), 1, %s772_s10  }
  0x1e   : > { %571 = dma.hbm_to_vmem [thread:$0]  (!%p885_p0), %s168_s28, 512, %s170_s29, %s157_s30, %s790_s8, %s790_s8, %s791_s15  }
  0x1f   : > { %181 = sbr.rel (%p178_p3) target bundleno = 88 (0x58), region = 28  ;;  %s509_s4 = sshll.u32 (!%p178_p3), %s901_s3, 5 }
  0x20   : > { %s184_s5 = scalar_lea.sflag (!%p178_p3), [#allocation3], %s901_s3  ;;  %s187_s7 = scalar_lea.vmem (!%p178_p3), [#allocation2], %s509_s4 }
  0x24   : > { %755 = dma.done.wait (%p858_p8), %s184_s5, 512  }
  0x25   : > { %757 = vsyncadd (%p858_p8), %s184_s5, 4294966784  ;;  %s194_s25 = scalar_lea.sflag [#allocation6], %s901_s3  ;;  %s197_s26 = scalar_lea.vmem [#allocation5], %s509_s4 }
  0x26   : > { %759 = dma.done.wait (%p858_p8), %s194_s25, 512  }
  0x27   : > { %761 = vsyncadd (%p858_p8), %s194_s25, 4294966784  ;;  %v240_v0 = vlaneseq  ;;  %s557_s27 = smul.u32 96, %s901_s3  ;;  %v251_v4 = vld [vmem:[%s197_s26] sm:$0xff]  ;;  %v512_v5 = vld [vmem:[%s197_s26 + $0x8] sm:$0xff]  ;;  %v792_v16 = vmov 0   ;;  %v793_v28 = vmov 0.0  }
  0x28   : > { %v514_v6 = vld [vmem:[%s197_s26 + $0x10] sm:$0xff]  ;;  %vm252_vm0 = vcmp.gt.f32.partialorder %v251_v4, -inf  ;;  %v516_v8 = vld [vmem:[%s197_s26 + $0x18] sm:$0xff]  ;;  %v915_v9 = vld [vmem:[%s187_s7] sm:$0xff]  ;;  %s558_s6 = smul.u32 96, %s780_s12  ;;  %s375_s20 = scalar_lea.sflag [#allocation4], %s901_s3 }
  0x29   : > { %v241_v1 = vshrl.u32 %v240_v0, 7  ;;  %v243_v2 = vand.u32 127, %v240_v0  ;;  %v917_v10 = vld [vmem:[%s187_s7 + $0x8] sm:$0xff]  ;;  %v253_v11 = vsel %vm252_vm0, %v251_v4, -inf  ;;  %v921_v13 = vld [vmem:[%s187_s7 + $0x10] sm:$0xff]  ;;  %s923_s21 = scalar_lea.vmem [#allocation7], %s557_s27 }
  0x2a   : > { %v259_v12 = vmax.f32 %v915_v9, %v917_v10  ;;  %vm258_vm1 = vcmp.gt.f32.partialorder %v512_v5, %v253_v11  ;;  %287 = vst [vmem:[%s923_s21] sm:$0xff] %v251_v4  ;;  %v515_v14 = vld [vmem:[%s187_s7 + $0x18] sm:$0xff]  ;;  %s386_s16 = scalar_lea.hbm %s993_s2, %s558_s6  ;;  %s387_s12 = sshll.u32 %s923_s21, 4  ;;  %s388_s12 = int_to_ptr.vmem [resolvable:$true] %s387_s12 }
  0x2b   : > { %v247_v3 = vmul.u32 128, %v241_v1  ;;  %v260_v15 = vsel %vm258_vm1, %v512_v5, %v253_v11  ;;  %v261_v17 = vsel %vm258_vm1, 1, %v792_v16  ;;  %524 = vst [vmem:[%s923_s21 + $0x18] sm:$0xff] %v512_v5  ;;  %s389_s18 = sshll.u32 %s386_s16, 4  ;;  %s722_s4 = scalar_lea.hbm %s993_s2, 192  ;;  %s390_s18 = int_to_ptr.hbm [resolvable:$true] %s389_s18 }
  0x2c   : > { %v267_v18 = vmax.f32 %v259_v12, %v921_v13  ;;  %vm266_vm2 = vcmp.gt.f32.partialorder %v514_v6, %v260_v15  ;;  %531 = vst [vmem:[%s923_s21 + $0x30] sm:$0xff] %v514_v6  ;;  %s716_s28 = sshra.s32 %s390_s18, 4  ;;  %s717_s28 = int_to_ptr.hbm [resolvable:$true] %s716_s28 }
  0x2d   : > { %v248_v7 = vadd.s32 %v247_v3, %v243_v2  ;;  %v269_v19 = vsel %vm266_vm2, 2, %v261_v17  ;;  %v268_v20 = vsel %vm266_vm2, %v514_v6, %v260_v15  ;;  %538 = vst [vmem:[%s923_s21 + $0x48] sm:$0xff] %v516_v8  ;;  %s718_s19 = scalar_lea.hbm %s717_s28, 96  ;;  %p723_p7 = scmp.lt.s32.totalorder %s717_s28, %s993_s2 }
  0x2e   : > { %v275_v21 = vmax.f32 %v267_v18, %v515_v14  ;;  %vm274_vm4 = vcmp.gt.f32.partialorder %v516_v8, %v268_v20  ;;  %p719_p4 = scmp.ne.s32.totalorder %s717_s28, %s718_s19  ;;  %p724_p8 = scmp.lt.s32.totalorder %s722_s4, %s718_s19 }
  0x2f   : > { %vm249_vm3 = vcmp.lt.s32.totalorder %v248_v7, 256  ;;  %v276_v22 = vsel %vm274_vm4, 3, %v269_v19 }
  0x30   : > { %v278_v23 = vsub.f32 %v915_v9, %v275_v21  ;;  %v277_v24 = vsel %vm249_vm3, %v276_v22, 4294967295  ;;  %v293_v25 = vsub.f32 %v917_v10, %v275_v21  ;;  %v310_v26 = vsub.f32 %v921_v13, %v275_v21  ;;  %p720_p5 = pnand %p719_p4, %p862_p9  ;;  %p725_p10 = por %p724_p8, %p723_p7 }
  0x31   : > { %v327_v27 = vsub.f32 %v515_v14, %v275_v21  ;;  %vm282_vm5 = vcmp.eq.s32.totalorder %v277_v24, 0  ;;  %vm298_vm6 = vcmp.eq.s32.totalorder %v277_v24, 1  ;;  %vm315_vm7 = vcmp.eq.s32.totalorder %v277_v24, 2 }
  0x32   : > { %vm332_vm8 = vcmp.eq.s32.totalorder %v277_v24, 3  ;;  %v517_v29 = vsel %vm282_vm5, 1.0, %v793_v28  ;;  %v522_v30 = vsel %vm298_vm6, 1.0, %v793_v28  ;;  %v529_v31 = vsel %vm315_vm7, 1.0, %v793_v28  ;;  %p721_p6 = pneg %p720_p5 }
  0x33   : > { %v536_v32 = vsel %vm332_vm8, 1.0, %v793_v28  ;;  %v279_v33 = vmul.f32 1.442695, %v278_v23  ;;  %v294_v34 = vmul.f32 1.442695, %v293_v25  ;;  %519 = vst [vmem:[%s923_s21 + $0x10] sm:$0xff] %v517_v29 }
  0x34   : > { %v311_v35 = vmul.f32 1.442695, %v310_v26  ;;  %v328_v36 = vmul.f32 1.442695, %v327_v27  ;;  %526 = vst [vmem:[%s923_s21 + $0x28] sm:$0xff] %v522_v30  ;;  %p726_p13 = pnand %p725_p10, %p721_p6 }
  0x35   : > { %632 = vpow2.f32 %v279_v33  ;;  %533 = vst [vmem:[%s923_s21 + $0x40] sm:$0xff] %v529_v31 }
  0x36   : > { %634 = vpow2.f32 %v294_v34  ;;  %540 = vst [vmem:[%s923_s21 + $0x58] sm:$0xff] %v536_v32 }
  0x37   : > { %636 = vpow2.f32 %v311_v35 }
  0x38   : > { %638 = vpow2.f32 %v328_v36 }
  0x3b   : > { %v633_v37 = vpop.eup %632 }
  0x3c   : > { %v635_v38 = vpop.eup %634 }
  0x3d   : > { %v637_v39 = vpop.eup %636  ;;  %v296_v40 = vadd.f32 %v635_v38, %v633_v37 }
  0x3e   : > { %v639_v41 = vpop.eup %638 }
  0x3f   : > { %v313_v42 = vadd.f32 %v637_v39, %v296_v40 }
  0x41   : > { %v330_v43 = vadd.f32 %v639_v41, %v313_v42 }
  0x43   : > { %640 = vlog2.f32 %v330_v43 }
  0x49   : > { %v641_v44 = vpop.eup %640 }
  0x4a   : > { %v344_v45 = vmul.f32 0.6931472, %v641_v44 }
  0x4c   : > { %v345_v46 = vadd.f32 %v344_v45, %v275_v21 }
  0x4e   : > { %v347_v47 = vsub.f32 %v345_v46, %v915_v9  ;;  %v354_v48 = vsub.f32 %v345_v46, %v917_v10  ;;  %v361_v49 = vsub.f32 %v345_v46, %v921_v13  ;;  %v368_v50 = vsub.f32 %v345_v46, %v515_v14 }
  0x50   : > { %v348_v51 = vsel %vm282_vm5, %v347_v47, 0.0  ;;  %v355_v52 = vsel %vm298_vm6, %v354_v48, 0.0  ;;  %v362_v53 = vsel %vm315_vm7, %v361_v49, 0.0  ;;  %v369_v54 = vsel %vm332_vm8, %v368_v50, 0.0 }
  0x51   : > { %542 = vst [vmem:[%s923_s21 + $0x8] sm:$0xff] %v348_v51 }
  0x52   : > { %545 = vst [vmem:[%s923_s21 + $0x20] sm:$0xff] %v355_v52 }
  0x53   : > { %548 = vst [vmem:[%s923_s21 + $0x38] sm:$0xff] %v362_v53 }
  0x54   : > { %551 = vst [vmem:[%s923_s21 + $0x50] sm:$0xff] %v369_v54 }
  0x55   : > { %729 = shalt.err (!%p726_p13)
}
  0x56   : > { %s794_s3 = smov 128   ;;  %s795_s25 = smov 8  }
  0x57   : > { %563 = dma.vmem_to_hbm [thread:$0]  (%p862_p9), %s388_s12, 1536, %s390_s18, %s375_s20, %s794_s3, %s794_s3, %s795_s25  }
  0x58 PF: > { %s404_s26 = sand.u32 1, %s768_s9   ;;  %p573_p0 = pnand %p501_p12, %p869_p11 }
  0x59   : > { %s405_s27 = scalar_lea.sflag [#allocation4], %s404_s26 }
  0x5a   : > { %p574_p1 = pneg %p573_p0 }
  0x5c   : > { %763 = dma.done.wait (%p574_p1), %s405_s27, 1536  }
  0x5d   : > { %765 = vsyncadd (%p574_p1), %s405_s27, 4294965760  ;;  %s21_s14 = sadd.s32 1, %s788_s14   ;;  %s999_s9 = smov %s772_s10 }
  0x5e   : > { %p18_p2 = scmp.ge.s32.totalorder %s21_s14, 4   ;;  %s1000_s10 = smov %s776_s11 }
  0x5f   : > { %s1001_s11 = smov %s867_s23  ;;  %s1002_s12 = smov %s784_s13 }
  0x60   : > { %s1003_s13 = smov %s1005_s17  ;;  %20 = sbr.rel (!%p18_p2) target bundleno = 8 (0x8), region = 107 }
  0x65   :  { %411 = vsyncpa [#allocation3], 1 }
  0x66   :  { %413 = vsyncpa [#allocation3 + $0x1], 1 }
  0x67   :  { %414 = vsyncpa [#allocation6], 1 }
  0x68   :  { %416 = vsyncpa [#allocation6 + $0x1], 1 }
  0x69   :  { %417 = vsyncpa [#allocation4], 1 }
  0x6a   :  { %419 = vsyncpa [#allocation4 + $0x1], 1 }

</bundles_post_ra>
